<compile_context>
chip_gen: v6e
topology: v6e:2x2x1
jax: 0.10.0
libtpu: 0.0.40
codegen_flags: <defaults>
</compile_context>

<pallas_src>
import jax
import jax.numpy as jnp
import numpy as np
from jax.experimental import pallas as pl
from jax.experimental.pallas import tpu as pltpu


# ---------------- Pallas kernel: fused maxpool + blur conv ----------------

def _blurpool_kernel(x_ref, s_ref, o_ref):
    """x_ref: (TM, L) packed rows; s_ref: (L-3, O) stencil; o_ref: (TM, O).

    Width-4 max-pool (stride 1) as a log2 tree (2 maxes), then the
    zero-padded stride-4 [1,3,3,1]/8 conv as one MXU matmul with the
    block-diagonal stencil.
    """
    x = x_ref[...]                                    # (TM, L)
    m1 = jnp.maximum(x[:, :-1], x[:, 1:])             # max(x[j], x[j+1])
    m2 = jnp.maximum(m1[:, :-2], m1[:, 2:])           # max over x[j..j+3]
    o_ref[...] = jnp.dot(
        m2, s_ref[...], preferred_element_type=jnp.float32
    ).astype(o_ref.dtype)


# ---------------- host-side constants / wrapper ----------------

def _build_stencil(width, w_out, pack, dtype):
    """Block-diagonal stencil folding zero-pad(2) + stride-4 conv, taps [1,3,3,1]/8.

    For each packed row r:  out[:, r*w_out + j] = sum_t taps[t] * pooled_r[4j+t-2]
    Pooled positions that straddle packed-row boundaries get zero weight, so the
    packing never mixes rows.
    """
    taps = np.array([1.0, 3.0, 3.0, 1.0], np.float32)
    taps = taps / taps.sum()
    wp = width - 3                       # pooled width (maxpool k=4, s=1, p=0)
    pad_w = 2                            # hardcoded in the reference module
    L, O = pack * width, pack * w_out
    s = np.zeros((L - 3, O), np.float32)
    for r in range(pack):
        for j in range(w_out):
            for t in range(4):
                p = 4 * j + t - pad_w
                if 0 <= p < wp:
                    s[r * width + p, r * w_out + j] = taps[t]
    return jnp.asarray(s, dtype)


def _choose_pack(M, W, w_out, max_lanes=2048, max_stencil_bytes=4 << 20):
    """Pick k | M so the output's last dim (k*w_out) is lane-dense (128-aligned),
    while keeping the packed row (k*W) and stencil small enough to stay HBM-bound."""
    if w_out >= 128:
        return 1
    best = 1
    for k in range(2, max(2, max_lanes // W) + 1):
        if M % k:
            continue
        if (k * W) * (k * w_out) * 4 > max_stencil_bytes:
            break
        if (k * w_out) % 128 == 0:
            return k                      # exact multiple of 128: unmasked stores
        if best == 1 and k * w_out >= 128:
            best = k
    return best


def blurpool_forward(x_nchw):
    """BlurPool forward. x_nchw: (N, C, H, W) float32, PyTorch NCHW layout."""
    N, C, H, W = x_nchw.shape
    assert W >= 4, "width must be >= 4 for the (1,4) pooling window"
    M = N * C * H
    wp = W - 3
    w_out = wp // 4 + 1                  # = floor((wp + 2*2 - 4)/4) + 1
    itemsize = jnp.dtype(x_nchw.dtype).itemsize

    # Lane-dense packing of k rows per slab row (pure views on both sides).
    k = _choose_pack(M, W, w_out)
    Mp, L, O = M // k, k * W, k * w_out

    x2 = x_nchw.reshape(Mp, L)           # pure row-major view of NCHW
    stencil = _build_stencil(W, w_out, k, x_nchw.dtype)
    stencil_bytes = int(stencil.size) * itemsize

    # Row tile from a v7x-safe VMEM budget (64 MiB physical per TC), ragged grid.
    budget = 40 * 1024 * 1024                                   # working-set budget
    tm_vmem = max(8, (budget - stencil_bytes) // (2 * itemsize * (L + O)))
    tm_amort = max(1024, (8 * 1024 * 1024) // (itemsize * L))   # >=~8 MiB/input block
    tm = int(min(tm_vmem, tm_amort))
    if tm >= Mp:
        # Split into >=2 blocks when possible so "parallel" uses both v7x cores.
        tm = (((-(-Mp // 2)) + 7) // 8) * 8 if Mp >= 16 else Mp
    else:
        tm = max(8, (tm // 8) * 8)
    grid = (pl.cdiv(Mp, tm),)

    est_vmem = stencil_bytes + 2 * itemsize * tm * (L + O) + (2 << 20)
    vmem_limit = int(min(max(est_vmem, 32 << 20), 56 << 20))

    out = pl.pallas_call(
        _blurpool_kernel,
        out_shape=jax.ShapeDtypeStruct((Mp, O), x_nchw.dtype),
        grid=grid,
        in_specs=[
            pl.BlockSpec((tm, L), lambda i: (i, 0)),        # row tile of packed x
            pl.BlockSpec((L - 3, O), lambda i: (0, 0)),     # VMEM-resident stencil
        ],
        out_specs=pl.BlockSpec((tm, O), lambda i: (i, 0)),
        compiler_params=pltpu.CompilerParams(
            dimension_semantics=("parallel",),
            vmem_limit_bytes=vmem_limit),
        cost_estimate=pl.CostEstimate(
            flops=2 * Mp * (L - 3) * O,
            transcendentals=0,
            bytes_accessed=itemsize * (Mp * L + Mp * O) + stencil_bytes),
    )(x2, stencil)
    return out.reshape(N, C, H, w_out)


# ---------------- pure-JAX reference (for a correctness check) ----------------

def _blurpool_ref(x):
    p = jax.lax.reduce_window(x, -jnp.inf, jax.lax.max,
                              (1, 1, 1, 4), (1, 1, 1, 1), 'VALID')
    taps = jnp.array([1.0, 3.0, 3.0, 1.0], jnp.float32) / 8.0
    c = x.shape[1]
    w = jnp.tile(taps.reshape(1, 1, 1, 4), (c, 1, 1, 1))       # (C,1,1,4) OIHW
    return jax.lax.conv_general_dilated(
        p, w, window_strides=(1, 4), padding=((0, 0), (2, 2)),
        dimension_numbers=('NCHW', 'OIHW', 'NCHW'),
        feature_group_count=c)


if __name__ == "__main__":
    key = jax.random.PRNGKey(0)
    # batch=2, in_chanel=4, spatial 16x16 (NCHW, PyTorch convention)
    x = jax.random.normal(key, (2, 4, 16, 16), dtype=jnp.float32)

    y = jax.jit(blurpool_forward)(x)
    y = jax.block_until_ready(y)
    assert y.shape == (2, 4, 16, 4), y.shape   # (N, C, H, floor((W-3)/4)+1)

    y_ref = jax.block_until_ready(_blurpool_ref(x))
    np.testing.assert_allclose(np.asarray(y), np.asarray(y_ref),
                               rtol=1e-5, atol=1e-5)
    print("KERNEL_OK")
</pallas_src>

<mosaic_0001>
module attributes {stable_mosaic.version = 11 : i64} {
  func.func @_blurpool_kernel(%arg0: i32, %arg1: memref<4x512xf32, #tpu.memory_space<vmem>>, %arg2: memref<509x128xf32, #tpu.memory_space<vmem>>, %arg3: memref<4x128xf32, #tpu.memory_space<vmem>>) attributes {dimension_semantics = [#tpu.dimension_semantics<parallel>], iteration_bounds = array<i64: 1>, scalar_prefetch = 0 : i64, scratch_operands = 0 : i64, tpu.core_type = #tpu.core_type<tc>, window_params = [{transform_indices = @transform_0, window_bounds = array<i64: 4, 512>}, {pipeline_mode = #tpu.pipeline_mode<synchronous>, transform_indices = @transform_1, window_bounds = array<i64: 509, 128>}, {transform_indices = @transform_2, window_bounds = array<i64: 4, 128>}]} {
    %c0 = arith.constant 0 : index
    %c0_0 = arith.constant 0 : index
    %0 = vector.load %arg1[%c0, %c0_0] : memref<4x512xf32, #tpu.memory_space<vmem>>, vector<4x512xf32>
    %1 = vector.extract_strided_slice %0 {offsets = [0, 0], sizes = [4, 511], strides = [1, 1]} : vector<4x512xf32> to vector<4x511xf32>
    %2 = vector.extract_strided_slice %0 {offsets = [0, 1], sizes = [4, 511], strides = [1, 1]} : vector<4x512xf32> to vector<4x511xf32>
    %3 = arith.maximumf %1, %2 : vector<4x511xf32>
    %4 = vector.extract_strided_slice %3 {offsets = [0, 0], sizes = [4, 509], strides = [1, 1]} : vector<4x511xf32> to vector<4x509xf32>
    %5 = vector.extract_strided_slice %3 {offsets = [0, 2], sizes = [4, 509], strides = [1, 1]} : vector<4x511xf32> to vector<4x509xf32>
    %6 = arith.maximumf %4, %5 : vector<4x509xf32>
    %c0_1 = arith.constant 0 : index
    %c0_2 = arith.constant 0 : index
    %7 = vector.load %arg2[%c0_1, %c0_2] : memref<509x128xf32, #tpu.memory_space<vmem>>, vector<509x128xf32>
    %cst = arith.constant dense<0.000000e+00> : vector<4x128xf32>
    %8 = tpu.matmul %6, %7, %cst {dimension_numbers = #tpu.dot_dimension_numbers<[1], [0], [0], [1], [0, 0, 1, 1], [], []>} : vector<4x509xf32>, vector<509x128xf32>, vector<4x128xf32> -> vector<4x128xf32>
    %c0_3 = arith.constant 0 : index
    %c0_4 = arith.constant 0 : index
    %9 = vector.load %arg3[%c0_3, %c0_4] : memref<4x128xf32, #tpu.memory_space<vmem>>, vector<4x128xf32>
    tpu.vector_store %arg3[%c0_3, %c0_4], %8 {strides = array<i32>} : memref<4x128xf32, #tpu.memory_space<vmem>>, vector<4x128xf32>,
    return
  }
  func.func @transform_0(%arg0: i32) -> (i32, i32) {
    %c0_i32 = arith.constant 0 : i32
    %c0_i32_0 = arith.constant 0 : i32
    return %arg0, %c0_i32 : i32, i32
  }
  func.func @transform_1(%arg0: i32) -> (i32, i32) {
    %c0_i32 = arith.constant 0 : i32
    %c0_i32_0 = arith.constant 0 : i32
    %c0_i32_1 = arith.constant 0 : i32
    return %c0_i32, %c0_i32_0 : i32, i32
  }
  func.func @transform_2(%arg0: i32) -> (i32, i32) {
    %c0_i32 = arith.constant 0 : i32
    %c0_i32_0 = arith.constant 0 : i32
    return %arg0, %c0_i32 : i32, i32
  }
}

</mosaic_0001>

<bundles_post_ra>
// kernel: blurpool_forward.1
= control target key start
LH: loop header
LB: loop body
LE: loop exit
PB: predicated region body
PF: predicated region fallthrough
CT: control target
= control target key end

     0   :  { %7 = vsyncpa [#allocation3], 0  ;;  %s381_s9 = smov [#allocation2]   ;;  %s425_s0 = inlined_call_operand.vmem [shape: f32[4,512], index: 0, kind: input, shape index: {}]   ;;  %s426_s1 = inlined_call_operand.hbm [shape: f32[509,128], index: 1, kind: input, shape index: {}]   ;;  %s427_s2 = inlined_call_operand.vmem [shape: f32[4,128], index: 2, kind: output, shape index: {}]  }
   0x1   :  { %s15_s10 = sshll.u32 %s381_s9, 4  ;;  %s16_s10 = int_to_ptr.vmem [resolvable:$true] %s15_s10 }
   0x2   :  { %s367_s11 = scalar_lea.vmem %s16_s10, 8192  ;;  %p372_p1 = scmp.lt.s32.totalorder %s16_s10, %s16_s10 }
   0x3   :  { %p368_p0 = scmp.ne.s32.totalorder %s16_s10, %s367_s11  ;;  %p373_p2 = scmp.lt.s32.totalorder %s367_s11, %s367_s11 }
   0x5   :  { %p374_p3 = por %p373_p2, %p372_p1 }
   0x7   :  { %p375_p4 = pnand %p374_p3, %p368_p0 }
   0x9   :  { %378 = shalt.err (!%p375_p4)
}
   0xa   :  { %s382_s12 = smov 128   ;;  %s383_s13 = smov 8  }
   0xb   :  { %21 = dma.hbm_to_vmem [thread:$0]  %s426_s1, 8192, %s16_s10, [#allocation3], %s382_s12, %s382_s12, %s383_s13  }
   0xc   :  { %379 = dma.done.wait [#allocation3], 8192  }
   0xd   :  { %380 = vsyncadd [#allocation3], 4294959104  ;;  %v407_v0 = vld [vmem:[%s425_s0] sm:$0xff]  ;;  %s384_s18 = smov 127   ;;  %v413_v1 = vld [vmem:[%s425_s0 + $0x8] sm:$0xff]  ;;  %vm132_vm0 = vcmask 1044480  }
   0xe   :  { %29 = vrot.lane.b32.xlu0 %v407_v0, %s384_s18  ;;  %v123_v2 = vld [vmem:[#allocation2 + $0x1f8] sm:$0x1f]  ;;  %v122_v6 = vld [vmem:[#allocation2 + $0x1f0] sm:$0xff]  ;;  %v121_v10 = vld [vmem:[#allocation2 + $0x1e8] sm:$0xff]  ;;  %vm35_vm1 = vcmask 1043456   ;;  %vm37_vm2 = vcmask 1039360  }
   0xf   :  { %v91_v3 = vld [vmem:[#allocation2 + $0xf8] sm:$0xff]  ;;  %319 = vmatprep.subr.msk.mxu1 %vm132_vm0, %v123_v2  ;;  %v90_v7 = vld [vmem:[#allocation2 + $0xf0] sm:$0xff]  ;;  %v89_v11 = vld [vmem:[#allocation2 + $0xe8] sm:$0xff]  ;;  %s385_s0 = smov 126   ;;  %vm53_vm3 = vcmask 1031168   ;;  %vm129_vm4 = vcmask 1022976  }
  0x10   :  { %v107_v4 = vld [vmem:[#allocation2 + $0x178] sm:$0xff]  ;;  %284 = vmatprep.subr.mxu0 %v91_v3  ;;  %v106_v8 = vld [vmem:[#allocation2 + $0x170] sm:$0xff]  ;;  %v105_v12 = vld [vmem:[#allocation2 + $0x168] sm:$0xff] }
  0x11   :  { %v75_v5 = vld [vmem:[#allocation2 + $0x78] sm:$0xff]  ;;  %320 = vmatpush3.msra.mxu1 %v107_v4  ;;  %v74_v9 = vld [vmem:[#allocation2 + $0x70] sm:$0xff]  ;;  %v73_v13 = vld [vmem:[#allocation2 + $0x68] sm:$0xff] }
  0x12   :  { %285 = vmatpush3.msra.mxu0 %v75_v5  ;;  %31 = vrot.lane.b32.xlu0 %v413_v1, %s384_s18  ;;  %v120_v14 = vld [vmem:[#allocation2 + $0x1e0] sm:$0xff]  ;;  %v119_v18 = vld [vmem:[#allocation2 + $0x1d8] sm:$0xff]  ;;  %v118_v22 = vld [vmem:[#allocation2 + $0x1d0] sm:$0xff] }
  0x13   :  { %321 = vmatprep.subr.mxu1 %v122_v6  ;;  %286 = vmatprep.subr.mxu0 %v90_v7  ;;  %v88_v15 = vld [vmem:[#allocation2 + $0xe0] sm:$0xff]  ;;  %v87_v19 = vld [vmem:[#allocation2 + $0xd8] sm:$0xff]  ;;  %v86_v23 = vld [vmem:[#allocation2 + $0xd0] sm:$0xff] }
  0x14   :  { %322 = vmatpush3.msra.mxu1 %v106_v8  ;;  %287 = vmatpush3.msra.mxu0 %v74_v9  ;;  %v104_v16 = vld [vmem:[#allocation2 + $0x160] sm:$0xff]  ;;  %v103_v20 = vld [vmem:[#allocation2 + $0x158] sm:$0xff]  ;;  %v102_v24 = vld [vmem:[#allocation2 + $0x150] sm:$0xff] }
  0x15   :  { %323 = vmatprep.subr.mxu1 %v121_v10  ;;  %288 = vmatprep.subr.mxu0 %v89_v11  ;;  %v72_v17 = vld [vmem:[#allocation2 + $0x60] sm:$0xff]  ;;  %v71_v21 = vld [vmem:[#allocation2 + $0x58] sm:$0xff]  ;;  %v70_v25 = vld [vmem:[#allocation2 + $0x50] sm:$0xff] }
  0x16   :  { %324 = vmatpush3.msra.mxu1 %v105_v12  ;;  %289 = vmatpush3.msra.mxu0 %v73_v13  ;;  %v117_v26 = vld [vmem:[#allocation2 + $0x1c8] sm:$0xff]  ;;  %v116_v30 = vld [vmem:[#allocation2 + $0x1c0] sm:$0xff]  ;;  %v115_v34 = vld [vmem:[#allocation2 + $0x1b8] sm:$0xff] }
  0x17   :  { %325 = vmatprep.subr.mxu1 %v120_v14  ;;  %290 = vmatprep.subr.mxu0 %v88_v15  ;;  %v85_v27 = vld [vmem:[#allocation2 + $0xc8] sm:$0xff]  ;;  %v84_v31 = vld [vmem:[#allocation2 + $0xc0] sm:$0xff]  ;;  %v83_v35 = vld [vmem:[#allocation2 + $0xb8] sm:$0xff] }
  0x18   :  { %326 = vmatpush3.msra.mxu1 %v104_v16  ;;  %291 = vmatpush3.msra.mxu0 %v72_v17  ;;  %v101_v28 = vld [vmem:[#allocation2 + $0x148] sm:$0xff]  ;;  %v100_v32 = vld [vmem:[#allocation2 + $0x140] sm:$0xff]  ;;  %v99_v36 = vld [vmem:[#allocation2 + $0x138] sm:$0xff] }
  0x19   :  { %327 = vmatprep.subr.mxu1 %v119_v18  ;;  %292 = vmatprep.subr.mxu0 %v87_v19  ;;  %v69_v29 = vld [vmem:[#allocation2 + $0x48] sm:$0xff]  ;;  %v68_v33 = vld [vmem:[#allocation2 + $0x40] sm:$0xff]  ;;  %v67_v37 = vld [vmem:[#allocation2 + $0x38] sm:$0xff] }
  0x1a   :  { %328 = vmatpush3.msra.mxu1 %v103_v20  ;;  %293 = vmatpush3.msra.mxu0 %v71_v21  ;;  %v114_v38 = vld [vmem:[#allocation2 + $0x1b0] sm:$0xff]  ;;  %v113_v42 = vld [vmem:[#allocation2 + $0x1a8] sm:$0xff]  ;;  %v112_v46 = vld [vmem:[#allocation2 + $0x1a0] sm:$0xff] }
  0x1b   :  { %329 = vmatprep.subr.mxu1 %v118_v22  ;;  %294 = vmatprep.subr.mxu0 %v86_v23  ;;  %v82_v39 = vld [vmem:[#allocation2 + $0xb0] sm:$0xff]  ;;  %v81_v43 = vld [vmem:[#allocation2 + $0xa8] sm:$0xff]  ;;  %v80_v47 = vld [vmem:[#allocation2 + $0xa0] sm:$0xff] }
  0x1c   :  { %330 = vmatpush3.msra.mxu1 %v102_v24  ;;  %295 = vmatpush3.msra.mxu0 %v70_v25  ;;  %v98_v40 = vld [vmem:[#allocation2 + $0x130] sm:$0xff]  ;;  %v97_v44 = vld [vmem:[#allocation2 + $0x128] sm:$0xff]  ;;  %v96_v48 = vld [vmem:[#allocation2 + $0x120] sm:$0xff] }
  0x1d   :  { %331 = vmatprep.subr.mxu1 %v117_v26  ;;  %296 = vmatprep.subr.mxu0 %v85_v27  ;;  %v66_v41 = vld [vmem:[#allocation2 + $0x30] sm:$0xff]  ;;  %v65_v45 = vld [vmem:[#allocation2 + $0x28] sm:$0xff]  ;;  %v64_v50 = vld [vmem:[#allocation2 + $0x20] sm:$0xff] }
  0x1e   :  { %332 = vmatpush3.msra.mxu1 %v101_v28  ;;  %297 = vmatpush3.msra.mxu0 %v69_v29  ;;  %v111_v51 = vld [vmem:[#allocation2 + $0x198] sm:$0xff]  ;;  %v110_v55 = vld [vmem:[#allocation2 + $0x190] sm:$0xff]  ;;  %v109_v62 = vld [vmem:[#allocation2 + $0x188] sm:$0xff] }
  0x1f   :  { %333 = vmatprep.subr.mxu1 %v116_v30  ;;  %298 = vmatprep.subr.mxu0 %v84_v31  ;;  %v79_v52 = vld [vmem:[#allocation2 + $0x98] sm:$0xff]  ;;  %v78_v57 = vld [vmem:[#allocation2 + $0x90] sm:$0xff]  ;;  %v77_v63 = vld [vmem:[#allocation2 + $0x88] sm:$0xff] }
  0x20   :  { %334 = vmatpush3.msra.mxu1 %v100_v32  ;;  %299 = vmatpush3.msra.mxu0 %v68_v33  ;;  %v95_v53 = vld [vmem:[#allocation2 + $0x118] sm:$0xff]  ;;  %v94_v58 = vld [vmem:[#allocation2 + $0x110] sm:$0xff]  ;;  %v93_v2 = vld [vmem:[#allocation2 + $0x108] sm:$0xff] }
  0x21   :  { %335 = vmatprep.subr.mxu1 %v115_v34  ;;  %300 = vmatprep.subr.mxu0 %v83_v35  ;;  %v63_v54 = vld [vmem:[#allocation2 + $0x18] sm:$0xff]  ;;  %v62_v61 = vld [vmem:[#allocation2 + $0x10] sm:$0xff]  ;;  %v61_v3 = vld [vmem:[#allocation2 + $0x8] sm:$0xff] }
  0x22   :  { %336 = vmatpush3.msra.mxu1 %v99_v36  ;;  %301 = vmatpush3.msra.mxu0 %v67_v37  ;;  %v108_v4 = vld [vmem:[#allocation2 + $0x180] sm:$0xff] }
  0x23   :  { %337 = vmatprep.subr.mxu1 %v114_v38  ;;  %302 = vmatprep.subr.mxu0 %v82_v39  ;;  %v76_v6 = vld [vmem:[#allocation2 + $0x80] sm:$0xff] }
  0x24   :  { %338 = vmatpush3.msra.mxu1 %v98_v40  ;;  %303 = vmatpush3.msra.mxu0 %v66_v41  ;;  %v92_v7 = vld [vmem:[#allocation2 + $0x100] sm:$0xff] }
  0x25   :  { %339 = vmatprep.subr.mxu1 %v113_v42  ;;  %304 = vmatprep.subr.mxu0 %v81_v43  ;;  %v60_v10 = vld [vmem:[#allocation2] sm:$0xff] }
  0x26   :  { %340 = vmatpush3.msra.mxu1 %v97_v44  ;;  %305 = vmatpush3.msra.mxu0 %v65_v45 }
  0x27   :  { %341 = vmatprep.subr.mxu1 %v112_v46  ;;  %306 = vmatprep.subr.mxu0 %v80_v47 }
  0x28   :  { %342 = vmatpush3.msra.mxu1 %v96_v48  ;;  %307 = vmatpush3.msra.mxu0 %v64_v50 }
  0x29   :  { %343 = vmatprep.subr.mxu1 %v111_v51  ;;  %308 = vmatprep.subr.mxu0 %v79_v52 }
  0x2a   :  { %344 = vmatpush3.msra.mxu1 %v95_v53  ;;  %309 = vmatpush3.msra.mxu0 %v63_v54 }
  0x2b   :  { %345 = vmatprep.subr.mxu1 %v110_v55  ;;  %310 = vmatprep.subr.mxu0 %v78_v57 }
  0x2c   :  { %346 = vmatpush3.msra.mxu1 %v94_v58  ;;  %311 = vmatpush3.msra.mxu0 %v62_v61 }
  0x2d   :  { %347 = vmatprep.subr.mxu1 %v109_v62  ;;  %312 = vmatprep.subr.mxu0 %v77_v63 }
  0x2e   :  { %348 = vmatpush3.msra.mxu1 %v93_v2  ;;  %313 = vmatpush3.msra.mxu0 %v61_v3 }
  0x2f   :  { %349 = vmatprep.subr.mxu1 %v108_v4  ;;  %314 = vmatprep.subr.mxu0 %v76_v6 }
  0x30   :  { %350 = vmatpush3.msra.mxu1 %v92_v7  ;;  %315 = vmatpush3.msra.mxu0 %v60_v10 }
  0x80   :  { %v30_v49 = vpop.permute.xlu0 %29 }
  0x81   :  { %v33_v59 = vrot.slane %v30_v49, 4 }
  0x84   :  { %v32_v56 = vpop.permute.xlu0 %31 }
  0x85   :  { %v34_v60 = vrot.slane %v32_v56, 4 }
  0x87   :  { %v36_v5 = vsel %vm35_vm1, %v33_v59, %v34_v60  ;;  %v39_v11 = vsel %vm37_vm2, %v32_v56, %v34_v60 }
  0x88   :  { %v38_v8 = vsel %vm37_vm2, %v30_v49, %v36_v5  ;;  %v43_v12 = vmax.f32 %v413_v1, %v39_v11 }
  0x89   :  { %v42_v9 = vmax.f32 %v407_v0, %v38_v8 }
  0x8b   :  { %46 = vrot.lane.b32.xlu1 %v42_v9, %s385_s0 }
  0x8f   :  { %48 = vrot.lane.b32.xlu1 %v43_v12, %s385_s0 }
  0xfd   :  { %v47_v13 = vpop.permute.xlu1 %46 }
  0xfe   :  { %v50_v15 = vrot.slane %v47_v13, 4 }
 0x101   :  { %v49_v14 = vpop.permute.xlu1 %48 }
 0x102   :  { %v51_v16 = vrot.slane %v49_v14, 4 }
 0x104   :  { %v52_v17 = vsel %vm35_vm1, %v50_v15, %v51_v16  ;;  %v55_v18 = vsel %vm53_vm3, %v49_v14, %v51_v16 }
 0x105   :  { %v59_v0 = vmax.f32 %v43_v12, %v55_v18  ;;  %v54_v19 = vsel %vm53_vm3, %v47_v13, %v52_v17 }
 0x106   :  { %v58_v20 = vmax.f32 %v42_v9, %v54_v19 }
 0x107   :  { %v127_v21 = vcombine.high %v59_v0, %v59_v0 }
 0x108   :  { %v126_v22 = vcombine.high %v58_v20, %v58_v20 }
 0x109   :  { %283 = vmatprep.mubr.msk.f32.mxu1 %vm129_vm4, %v127_v21 }
 0x10a   :  { %200 = vmatprep.mubr.f32.mxu0 %v126_v22  ;;  %271 = vmatmul.mubr.f32.vlgmr.msra.gmra.mxu1 %v59_v0 }
 0x10b   :  { %201 = vmatmul.mubr.f32.vlgmr.msra.gmra.mxu0 %v58_v20 }
 0x1ca   :  { %v351_v1 = vpop.f32.mrf.mxu1 }
 0x1cb   :  { %v316_v23 = vpop.f32.mrf.mxu0 }
 0x1cc   :  { %v352_v24 = vpop.f32.mrf.mxu1 }
 0x1cd   :  { %v353_v25 = vadd.f32 %v352_v24, %v351_v1  ;;  %v317_v26 = vpop.f32.mrf.mxu0 }
 0x1ce   :  { %v318_v27 = vadd.f32 %v317_v26, %v316_v23 }
 0x1d0   :  { %v273_v28 = vadd.f32 %v353_v25, %v318_v27 }
 0x1d2   :  { %276 = vst [vmem:[%s427_s2] sm:$0xf] %v273_v28 }
 0x1d3   :  { %281 = vsyncpa [#allocation3], 1 }

</bundles_post_ra>
